<compile_context>
chip_gen: v6e
topology: v6e:2x2x1
jax: 0.10.0
libtpu: 0.0.40
codegen_flags: <defaults>
</compile_context>

<pallas_src>
import jax
import jax.numpy as jnp
from jax import lax
from jax.experimental import pallas as pl
from jax.experimental.pallas import tpu as pltpu


# ----------------------------------------------------------------------------
# Pallas kernel: whole causal-dilated-conv stack, batch flattened into rows
# ----------------------------------------------------------------------------
def _make_encoder_kernel(B, T, dilations, ksizes):
    BT = B * T
    num_layers = len(ksizes)

    def kernel(tgt_ref, sta_ref, dyn_ref, *refs):
        # refs = (w0, b0, w1, b1, ..., out_ref)
        out_ref = refs[-1]
        wb = refs[:-1]

        # ---- fused input assembly: [target | tiled static | dynamic] --------
        tgt = tgt_ref[...].astype(jnp.float32)                   # (BT, 1)
        dyn = dyn_ref[...].astype(jnp.float32)                   # (BT, D)
        sta = sta_ref[...].astype(jnp.float32)                   # (B, S)
        S = sta.shape[1]
        sta_b = jnp.broadcast_to(sta[:, None, :], (B, T, S)).reshape(BT, S)
        h = jnp.concatenate([tgt, sta_b, dyn], axis=1)           # (BT, C0), f32

        # batch-local time index for causal masking after cross-row rolls
        row = lax.broadcasted_iota(jnp.int32, (BT, 1), 0)
        t_local = row % T                                        # (BT, 1)

        # memoize masks per unique shift so each comparison is built once
        mask_cache = {}

        def mask_for(s):
            if s not in mask_cache:
                mask_cache[s] = t_local >= s
            return mask_cache[s]

        for li in range(num_layers):
            w2d = wb[2 * li][...]                                # (K*Cin, Cout) bf16
            b = wb[2 * li + 1][...]                              # (1, Cout)    f32
            K = ksizes[li]
            d = dilations[li]

            # im2col: one (BT, K*Cin) slab; tap k reads x[t - (K-1-k)*d]
            cols = []
            for k in range(K):
                s = (K - 1 - k) * d
                if s == 0:
                    cols.append(h)
                else:
                    xs = pltpu.roll(h, shift=s, axis=0)
                    xs = jnp.where(mask_for(s), xs, jnp.float32(0.0))
                    cols.append(xs)
            slab = jnp.concatenate(cols, axis=1)                 # (BT, K*Cin)

            # single MXU matmul per layer: bf16 operands, f32 accumulation
            acc = jnp.dot(slab.astype(jnp.bfloat16), w2d,
                          preferred_element_type=jnp.float32)    # (BT, Cout)
            h = jnp.maximum(acc + b, 0.0)                        # f32 ReLU

        out_ref[...] = h.astype(out_ref.dtype)                   # (BT, C_last)

    return kernel


# ----------------------------------------------------------------------------
# Wrapper: reshapes, weight packing, pallas_call, residual concat + slicing
# ----------------------------------------------------------------------------
def hierarchical_encoder_pallas(target, static_features, dynamic_features,
                                weights, biases, dilations):
    """Returns (static_code (B, C_last+1), dynamic_code (B, T, C_last+1))."""
    target = target.astype(jnp.float32)
    static_features = static_features.astype(jnp.float32)
    dynamic_features = dynamic_features.astype(jnp.float32)

    B, T = target.shape
    S = static_features.shape[1]
    D = dynamic_features.shape[2]
    BT = B * T
    c_last = weights[-1].shape[2]

    # batch flattened into rows (free reshapes; no assembled tensor in HBM)
    tgt2 = target.reshape(BT, 1)
    dyn2 = dynamic_features.reshape(BT, D)

    ksizes = tuple(int(w.shape[0]) for w in weights)
    # pack weights for im2col: (K, Cin, Cout) -> (K*Cin, Cout), bf16 MXU operands
    w_packed = [w.reshape(w.shape[0] * w.shape[1], w.shape[2]).astype(jnp.bfloat16)
                for w in weights]
    b_packed = [b.reshape(1, -1).astype(jnp.float32) for b in biases]

    in_specs = [
        pl.BlockSpec((BT, 1), lambda i: (0, 0)),
        pl.BlockSpec((B, S), lambda i: (0, 0)),
        pl.BlockSpec((BT, D), lambda i: (0, 0)),
    ]
    args = [tgt2, static_features, dyn2]
    for wp, bp in zip(w_packed, b_packed):
        in_specs.append(pl.BlockSpec(wp.shape, lambda i: (0, 0)))
        in_specs.append(pl.BlockSpec(bp.shape, lambda i: (0, 0)))
        args.append(wp)
        args.append(bp)

    kernel = _make_encoder_kernel(B, T, tuple(int(d) for d in dilations), ksizes)

    conv_out = pl.pallas_call(
        kernel,
        out_shape=jax.ShapeDtypeStruct((BT, c_last), jnp.float32),
        grid=(1,),
        in_specs=in_specs,
        out_specs=pl.BlockSpec((BT, c_last), lambda i: (0, 0)),
        compiler_params=pltpu.CompilerParams(
            dimension_semantics=("arbitrary",)),
    )(*args)

    # residual concat with target + static-code slice done in plain JAX
    ct = jnp.concatenate(
        [conv_out.reshape(B, T, c_last), target[..., None]], axis=2)
    static_code = ct[:, -1, :]
    return static_code, ct


# ----------------------------------------------------------------------------
# Pure-JAX reference (for correctness check)
# ----------------------------------------------------------------------------
def _assemble_inputs(target, static_features, dynamic_features):
    # target: (B, T), static: (B, S), dynamic: (B, T, D) -> (B, T, 1+S+D)
    B, T = target.shape
    tgt3 = target[..., None]
    tiled_static = jnp.broadcast_to(static_features[:, None, :],
                                    (B, T, static_features.shape[1]))
    return jnp.concatenate([tgt3, tiled_static, dynamic_features], axis=2)


def reference_forward(target, static_features, dynamic_features,
                      weights, biases, dilations,
                      compute_dtype=jnp.float32):
    x = _assemble_inputs(target, static_features, dynamic_features)
    ct = jnp.transpose(x, (0, 2, 1))                          # (B, C, T) like NCW
    for w, b, d in zip(weights, biases, dilations):
        K = w.shape[0]
        pad = (K - 1) * d
        w_oih = jnp.transpose(w, (2, 1, 0)).astype(compute_dtype)
        ct = lax.conv_general_dilated(
            ct.astype(compute_dtype), w_oih, window_strides=(1,),
            padding=[(pad, 0)], rhs_dilation=(d,),
            dimension_numbers=("NCH", "OIH", "NCH"),
            preferred_element_type=jnp.float32)
        ct = jnp.maximum(ct + b[None, :, None], 0.0)
    ct = jnp.transpose(ct, (0, 2, 1))                         # (B, T, C_last)
    ct = jnp.concatenate([ct, target[..., None]], axis=2)     # residual concat
    return ct[:, -1, :], ct


# ----------------------------------------------------------------------------
# Main
# ----------------------------------------------------------------------------
if __name__ == "__main__":
    # module hyperparameters
    B, T = 2, 16
    num_static, num_dynamic = 3, 4
    input_size = 1 + num_static + num_dynamic                 # 8 (use_covariates)
    channels_seq = [16, 16, 8]
    kernel_size_seq = [3, 3, 2]
    dilation_seq = [1, 2, 4]

    key = jax.random.PRNGKey(0)
    k_t, k_s, k_d, k_w = jax.random.split(key, 4)
    target = jax.random.normal(k_t, (B, T), jnp.float32)
    static_features = jax.random.normal(k_s, (B, num_static), jnp.float32)
    dynamic_features = jax.random.normal(k_d, (B, T, num_dynamic), jnp.float32)

    # deterministic parameter init (PyTorch weight (Cout,Cin,K) stored as (K,Cin,Cout))
    weights, biases = [], []
    cin = input_size
    wkeys = jax.random.split(k_w, len(channels_seq) * 2)
    for i, (cout, ks) in enumerate(zip(channels_seq, kernel_size_seq)):
        w = 0.2 * jax.random.normal(wkeys[2 * i], (ks, cin, cout), jnp.float32)
        b = 0.1 * jax.random.normal(wkeys[2 * i + 1], (cout,), jnp.float32)
        weights.append(w)
        biases.append(b)
        cin = cout

    static_code, dyn_code = hierarchical_encoder_pallas(
        target, static_features, dynamic_features, weights, biases, dilation_seq)
    static_code = jax.block_until_ready(static_code)
    dyn_code = jax.block_until_ready(dyn_code)

    # reference with identical bf16 matmul operands (tight check of structure)
    ref_static_bf, ref_dyn_bf = reference_forward(
        target, static_features, dynamic_features, weights, biases,
        dilation_seq, compute_dtype=jnp.bfloat16)
    # pure-f32 reference (loose sanity bound; kernel matmuls are bf16)
    ref_static_f32, ref_dyn_f32 = reference_forward(
        target, static_features, dynamic_features, weights, biases,
        dilation_seq, compute_dtype=jnp.float32)

    assert dyn_code.shape == (B, T, channels_seq[-1] + 1)
    assert static_code.shape == (B, channels_seq[-1] + 1)
    assert jnp.allclose(dyn_code, ref_dyn_bf, rtol=1e-2, atol=1e-2)
    assert jnp.allclose(static_code, ref_static_bf, rtol=1e-2, atol=1e-2)
    assert jnp.allclose(dyn_code, ref_dyn_f32, rtol=1e-1, atol=1e-1)
    assert jnp.allclose(static_code, ref_static_f32, rtol=1e-1, atol=1e-1)

    print("KERNEL_OK")
</pallas_src>

<mosaic_0001>
module attributes {stable_mosaic.version = 11 : i64} {
  func.func @kernel(%arg0: i32, %arg1: memref<32x1xf32, #tpu.memory_space<vmem>>, %arg2: memref<2x3xf32, #tpu.memory_space<vmem>>, %arg3: memref<32x4xf32, #tpu.memory_space<vmem>>, %arg4: memref<24x16xbf16, #tpu.memory_space<vmem>>, %arg5: memref<1x16xf32, #tpu.memory_space<vmem>>, %arg6: memref<48x16xbf16, #tpu.memory_space<vmem>>, %arg7: memref<1x16xf32, #tpu.memory_space<vmem>>, %arg8: memref<32x8xbf16, #tpu.memory_space<vmem>>, %arg9: memref<1x8xf32, #tpu.memory_space<vmem>>, %arg10: memref<32x8xf32, #tpu.memory_space<vmem>>) attributes {dimension_semantics = [#tpu.dimension_semantics<arbitrary>], iteration_bounds = array<i64: 1>, scalar_prefetch = 0 : i64, scratch_operands = 0 : i64, tpu.core_type = #tpu.core_type<tc>, window_params = [{pipeline_mode = #tpu.pipeline_mode<synchronous>, transform_indices = @transform_0, window_bounds = array<i64: 32, 1>}, {pipeline_mode = #tpu.pipeline_mode<synchronous>, transform_indices = @transform_1, window_bounds = array<i64: 2, 3>}, {pipeline_mode = #tpu.pipeline_mode<synchronous>, transform_indices = @transform_2, window_bounds = array<i64: 32, 4>}, {pipeline_mode = #tpu.pipeline_mode<synchronous>, transform_indices = @transform_3, window_bounds = array<i64: 24, 16>}, {pipeline_mode = #tpu.pipeline_mode<synchronous>, transform_indices = @transform_4, window_bounds = array<i64: 1, 16>}, {pipeline_mode = #tpu.pipeline_mode<synchronous>, transform_indices = @transform_5, window_bounds = array<i64: 48, 16>}, {pipeline_mode = #tpu.pipeline_mode<synchronous>, transform_indices = @transform_6, window_bounds = array<i64: 1, 16>}, {pipeline_mode = #tpu.pipeline_mode<synchronous>, transform_indices = @transform_7, window_bounds = array<i64: 32, 8>}, {pipeline_mode = #tpu.pipeline_mode<synchronous>, transform_indices = @transform_8, window_bounds = array<i64: 1, 8>}, {pipeline_mode = #tpu.pipeline_mode<synchronous>, transform_indices = @transform_9, window_bounds = array<i64: 32, 8>}]} {
    %c0 = arith.constant 0 : index
    %c0_0 = arith.constant 0 : index
    %0 = vector.load %arg1[%c0, %c0_0] : memref<32x1xf32, #tpu.memory_space<vmem>>, vector<32x1xf32>
    %c0_1 = arith.constant 0 : index
    %c0_2 = arith.constant 0 : index
    %1 = vector.load %arg3[%c0_1, %c0_2] : memref<32x4xf32, #tpu.memory_space<vmem>>, vector<32x4xf32>
    %c0_3 = arith.constant 0 : index
    %c0_4 = arith.constant 0 : index
    %2 = vector.load %arg2[%c0_3, %c0_4] : memref<2x3xf32, #tpu.memory_space<vmem>>, vector<2x3xf32>
    %3 = vector.shape_cast %2 : vector<2x3xf32> to vector<2x1x3xf32>
    %4 = vector.shape_cast %3 : vector<2x1x3xf32> to vector<2x1x3xf32>
    %5 = vector.broadcast %4 : vector<2x1x3xf32> to vector<2x16x3xf32>
    %6 = vector.shape_cast %5 : vector<2x16x3xf32> to vector<32x3xf32>
    %7 = tpu.concatenate %0, %6, %1 in 1 : vector<32x1xf32>, vector<32x3xf32>, vector<32x4xf32> -> vector<32x8xf32>
    %8 = tpu.iota {dimensions = array<i32: 0>} : vector<32x1xi32>
    %c16_i32 = arith.constant 16 : i32
    %c0_i32 = arith.constant 0 : i32
    %9 = arith.cmpi eq, %c16_i32, %c0_i32 : i32
    %c1_i32 = arith.constant 1 : i32
    %10 = arith.select %9, %c1_i32, %c16_i32 : i32
    %11 = vector.broadcast %10 : i32 to vector<32x1xi32>
    %12 = arith.remsi %8, %11 : vector<32x1xi32>
    %c0_i32_5 = arith.constant 0 : i32
    %13 = vector.broadcast %c0_i32_5 : i32 to vector<32x1xi32>
    %14 = arith.cmpi ne, %12, %13 : vector<32x1xi32>
    %c0_i32_6 = arith.constant 0 : i32
    %15 = vector.broadcast %c0_i32_6 : i32 to vector<32x1xi32>
    %16 = arith.cmpi slt, %12, %15 : vector<32x1xi32>
    %c0_i32_7 = arith.constant 0 : i32
    %17 = arith.cmpi slt, %10, %c0_i32_7 : i32
    %18 = vector.broadcast %17 : i1 to vector<32x1xi1>
    %19 = vector.broadcast %18 : vector<32x1xi1> to vector<32x1xi1>
    %20 = arith.xori %16, %19 : vector<32x1xi1>
    %21 = arith.andi %20, %14 : vector<32x1xi1>
    %22 = vector.broadcast %10 : i32 to vector<32x1xi32>
    %23 = arith.addi %12, %22 : vector<32x1xi32>
    %24 = arith.select %21, %23, %12 : vector<32x1xi1>, vector<32x1xi32>
    %c0_8 = arith.constant 0 : index
    %c0_9 = arith.constant 0 : index
    %25 = vector.load %arg4[%c0_8, %c0_9] : memref<24x16xbf16, #tpu.memory_space<vmem>>, vector<24x16xbf16>
    %c0_10 = arith.constant 0 : index
    %c0_11 = arith.constant 0 : index
    %26 = vector.load %arg5[%c0_10, %c0_11] : memref<1x16xf32, #tpu.memory_space<vmem>>, vector<1x16xf32>
    %c2_i32 = arith.constant 2 : i32
    %27 = tpu.dynamic_rotate %7 by %c2_i32 dim 0 : vector<32x8xf32>, i32 -> vector<32x8xf32>
    %c2_i32_12 = arith.constant 2 : i32
    %28 = vector.broadcast %c2_i32_12 : i32 to vector<32x1xi32>
    %29 = arith.cmpi sge, %24, %28 : vector<32x1xi32>
    %cst = arith.constant 0.000000e+00 : f32
    %30 = vector.shape_cast %29 : vector<32x1xi1> to vector<32x1xi1>
    %31 = vector.broadcast %30 : vector<32x1xi1> to vector<32x8xi1>
    %32 = vector.broadcast %cst : f32 to vector<32x8xf32>
    %33 = arith.select %31, %27, %32 : vector<32x8xi1>, vector<32x8xf32>
    %c1_i32_13 = arith.constant 1 : i32
    %34 = tpu.dynamic_rotate %7 by %c1_i32_13 dim 0 : vector<32x8xf32>, i32 -> vector<32x8xf32>
    %c1_i32_14 = arith.constant 1 : i32
    %35 = vector.broadcast %c1_i32_14 : i32 to vector<32x1xi32>
    %36 = arith.cmpi sge, %24, %35 : vector<32x1xi32>
    %cst_15 = arith.constant 0.000000e+00 : f32
    %37 = vector.shape_cast %36 : vector<32x1xi1> to vector<32x1xi1>
    %38 = vector.broadcast %37 : vector<32x1xi1> to vector<32x8xi1>
    %39 = vector.broadcast %cst_15 : f32 to vector<32x8xf32>
    %40 = arith.select %38, %34, %39 : vector<32x8xi1>, vector<32x8xf32>
    %41 = tpu.concatenate %33, %40, %7 in 1 : vector<32x8xf32>, vector<32x8xf32>, vector<32x8xf32> -> vector<32x24xf32>
    %42 = arith.truncf %41 : vector<32x24xf32> to vector<32x24xbf16>
    %cst_16 = arith.constant dense<0.000000e+00> : vector<32x16xf32>
    %43 = tpu.matmul %42, %25, %cst_16 {dimension_numbers = #tpu.dot_dimension_numbers<[1], [0], [0], [1], [0, 0, 1, 1], [], []>} : vector<32x24xbf16>, vector<24x16xbf16>, vector<32x16xf32> -> vector<32x16xf32>
    %44 = vector.broadcast %26 : vector<1x16xf32> to vector<32x16xf32>
    %45 = arith.addf %43, %44 : vector<32x16xf32>
    %cst_17 = arith.constant 0.000000e+00 : f32
    %46 = vector.broadcast %cst_17 : f32 to vector<32x16xf32>
    %47 = arith.maximumf %45, %46 : vector<32x16xf32>
    %c0_18 = arith.constant 0 : index
    %c0_19 = arith.constant 0 : index
    %48 = vector.load %arg6[%c0_18, %c0_19] : memref<48x16xbf16, #tpu.memory_space<vmem>>, vector<48x16xbf16>
    %c0_20 = arith.constant 0 : index
    %c0_21 = arith.constant 0 : index
    %49 = vector.load %arg7[%c0_20, %c0_21] : memref<1x16xf32, #tpu.memory_space<vmem>>, vector<1x16xf32>
    %c4_i32 = arith.constant 4 : i32
    %50 = tpu.dynamic_rotate %47 by %c4_i32 dim 0 : vector<32x16xf32>, i32 -> vector<32x16xf32>
    %c4_i32_22 = arith.constant 4 : i32
    %51 = vector.broadcast %c4_i32_22 : i32 to vector<32x1xi32>
    %52 = arith.cmpi sge, %24, %51 : vector<32x1xi32>
    %cst_23 = arith.constant 0.000000e+00 : f32
    %53 = vector.shape_cast %52 : vector<32x1xi1> to vector<32x1xi1>
    %54 = vector.broadcast %53 : vector<32x1xi1> to vector<32x16xi1>
    %55 = vector.broadcast %cst_23 : f32 to vector<32x16xf32>
    %56 = arith.select %54, %50, %55 : vector<32x16xi1>, vector<32x16xf32>
    %c2_i32_24 = arith.constant 2 : i32
    %57 = tpu.dynamic_rotate %47 by %c2_i32_24 dim 0 : vector<32x16xf32>, i32 -> vector<32x16xf32>
    %cst_25 = arith.constant 0.000000e+00 : f32
    %58 = vector.shape_cast %29 : vector<32x1xi1> to vector<32x1xi1>
    %59 = vector.broadcast %58 : vector<32x1xi1> to vector<32x16xi1>
    %60 = vector.broadcast %cst_25 : f32 to vector<32x16xf32>
    %61 = arith.select %59, %57, %60 : vector<32x16xi1>, vector<32x16xf32>
    %62 = tpu.concatenate %56, %61, %47 in 1 : vector<32x16xf32>, vector<32x16xf32>, vector<32x16xf32> -> vector<32x48xf32>
    %63 = arith.truncf %62 : vector<32x48xf32> to vector<32x48xbf16>
    %cst_26 = arith.constant dense<0.000000e+00> : vector<32x16xf32>
    %64 = tpu.matmul %63, %48, %cst_26 {dimension_numbers = #tpu.dot_dimension_numbers<[1], [0], [0], [1], [0, 0, 1, 1], [], []>} : vector<32x48xbf16>, vector<48x16xbf16>, vector<32x16xf32> -> vector<32x16xf32>
    %65 = vector.broadcast %49 : vector<1x16xf32> to vector<32x16xf32>
    %66 = arith.addf %64, %65 : vector<32x16xf32>
    %cst_27 = arith.constant 0.000000e+00 : f32
    %67 = vector.broadcast %cst_27 : f32 to vector<32x16xf32>
    %68 = arith.maximumf %66, %67 : vector<32x16xf32>
    %c0_28 = arith.constant 0 : index
    %c0_29 = arith.constant 0 : index
    %69 = vector.load %arg8[%c0_28, %c0_29] : memref<32x8xbf16, #tpu.memory_space<vmem>>, vector<32x8xbf16>
    %c0_30 = arith.constant 0 : index
    %c0_31 = arith.constant 0 : index
    %70 = vector.load %arg9[%c0_30, %c0_31] : memref<1x8xf32, #tpu.memory_space<vmem>>, vector<1x8xf32>
    %c4_i32_32 = arith.constant 4 : i32
    %71 = tpu.dynamic_rotate %68 by %c4_i32_32 dim 0 : vector<32x16xf32>, i32 -> vector<32x16xf32>
    %cst_33 = arith.constant 0.000000e+00 : f32
    %72 = vector.shape_cast %52 : vector<32x1xi1> to vector<32x1xi1>
    %73 = vector.broadcast %72 : vector<32x1xi1> to vector<32x16xi1>
    %74 = vector.broadcast %cst_33 : f32 to vector<32x16xf32>
    %75 = arith.select %73, %71, %74 : vector<32x16xi1>, vector<32x16xf32>
    %76 = tpu.concatenate %75, %68 in 1 : vector<32x16xf32>, vector<32x16xf32> -> vector<32x32xf32>
    %77 = arith.truncf %76 : vector<32x32xf32> to vector<32x32xbf16>
    %cst_34 = arith.constant dense<0.000000e+00> : vector<32x8xf32>
    %78 = tpu.matmul %77, %69, %cst_34 {dimension_numbers = #tpu.dot_dimension_numbers<[1], [0], [0], [1], [0, 0, 1, 1], [], []>} : vector<32x32xbf16>, vector<32x8xbf16>, vector<32x8xf32> -> vector<32x8xf32>
    %79 = vector.broadcast %70 : vector<1x8xf32> to vector<32x8xf32>
    %80 = arith.addf %78, %79 : vector<32x8xf32>
    %cst_35 = arith.constant 0.000000e+00 : f32
    %81 = vector.broadcast %cst_35 : f32 to vector<32x8xf32>
    %82 = arith.maximumf %80, %81 : vector<32x8xf32>
    %c0_36 = arith.constant 0 : index
    %c0_37 = arith.constant 0 : index
    %83 = vector.load %arg10[%c0_36, %c0_37] : memref<32x8xf32, #tpu.memory_space<vmem>>, vector<32x8xf32>
    tpu.vector_store %arg10[%c0_36, %c0_37], %82 {strides = array<i32>} : memref<32x8xf32, #tpu.memory_space<vmem>>, vector<32x8xf32>,
    return
  }
  func.func @transform_0(%arg0: i32) -> (i32, i32) {
    %c0_i32 = arith.constant 0 : i32
    %c0_i32_0 = arith.constant 0 : i32
    %c0_i32_1 = arith.constant 0 : i32
    return %c0_i32, %c0_i32_0 : i32, i32
  }
  func.func @transform_1(%arg0: i32) -> (i32, i32) {
    %c0_i32 = arith.constant 0 : i32
    %c0_i32_0 = arith.constant 0 : i32
    %c0_i32_1 = arith.constant 0 : i32
    return %c0_i32, %c0_i32_0 : i32, i32
  }
  func.func @transform_2(%arg0: i32) -> (i32, i32) {
    %c0_i32 = arith.constant 0 : i32
    %c0_i32_0 = arith.constant 0 : i32
    %c0_i32_1 = arith.constant 0 : i32
    return %c0_i32, %c0_i32_0 : i32, i32
  }
  func.func @transform_3(%arg0: i32) -> (i32, i32) {
    %c0_i32 = arith.constant 0 : i32
    %c0_i32_0 = arith.constant 0 : i32
    %c0_i32_1 = arith.constant 0 : i32
    return %c0_i32, %c0_i32_0 : i32, i32
  }
  func.func @transform_4(%arg0: i32) -> (i32, i32) {
    %c0_i32 = arith.constant 0 : i32
    %c0_i32_0 = arith.constant 0 : i32
    %c0_i32_1 = arith.constant 0 : i32
    return %c0_i32, %c0_i32_0 : i32, i32
  }
  func.func @transform_5(%arg0: i32) -> (i32, i32) {
    %c0_i32 = arith.constant 0 : i32
    %c0_i32_0 = arith.constant 0 : i32
    %c0_i32_1 = arith.constant 0 : i32
    return %c0_i32, %c0_i32_0 : i32, i32
  }
  func.func @transform_6(%arg0: i32) -> (i32, i32) {
    %c0_i32 = arith.constant 0 : i32
    %c0_i32_0 = arith.constant 0 : i32
    %c0_i32_1 = arith.constant 0 : i32
    return %c0_i32, %c0_i32_0 : i32, i32
  }
  func.func @transform_7(%arg0: i32) -> (i32, i32) {
    %c0_i32 = arith.constant 0 : i32
    %c0_i32_0 = arith.constant 0 : i32
    %c0_i32_1 = arith.constant 0 : i32
    return %c0_i32, %c0_i32_0 : i32, i32
  }
  func.func @transform_8(%arg0: i32) -> (i32, i32) {
    %c0_i32 = arith.constant 0 : i32
    %c0_i32_0 = arith.constant 0 : i32
    %c0_i32_1 = arith.constant 0 : i32
    return %c0_i32, %c0_i32_0 : i32, i32
  }
  func.func @transform_9(%arg0: i32) -> (i32, i32) {
    %c0_i32 = arith.constant 0 : i32
    %c0_i32_0 = arith.constant 0 : i32
    %c0_i32_1 = arith.constant 0 : i32
    return %c0_i32, %c0_i32_0 : i32, i32
  }
}

</mosaic_0001>

<bundles_post_ra>
// kernel: tpu_custom_call.1
= control target key start
LH: loop header
LB: loop body
LE: loop exit
PB: predicated region body
PF: predicated region fallthrough
CT: control target
= control target key end

     0   :  { %v54_v0 = vlaneseq  ;;  %v765_v2 = vmov 1966171168   ;;  %s766_s15 = smov 4   ;;  %s767_s19 = smov 1   ;;  %vm95_vm0 = vcmask 7168   ;;  %vm100_vm1 = vcmask 31744   ;;  %s1007_s1 = inlined_call_operand.vmem [shape: f32[2,3], index: 1, kind: input, shape index: {}]   ;;  %s1008_s2 = inlined_call_operand.vmem [shape: f32[32,4], index: 2, kind: input, shape index: {}]   ;;  %s1009_s0 = inlined_call_operand.vmem [shape: f32[32,1], index: 0, kind: input, shape index: {}]   ;;  %s1010_s3 = inlined_call_operand.vmem [shape: bf16[24,16], index: 3, kind: input, shape index: {}]   ;;  %s1011_s5 = inlined_call_operand.vmem [shape: bf16[48,16], index: 5, kind: input, shape index: {}]   ;;  %s1012_s4 = inlined_call_operand.vmem [shape: f32[1,16], index: 4, kind: input, shape index: {}]   ;;  %s1013_s7 = inlined_call_operand.vmem [shape: bf16[32,8], index: 7, kind: input, shape index: {}]   ;;  %s1014_s6 = inlined_call_operand.vmem [shape: f32[1,16], index: 6, kind: input, shape index: {}]   ;;  %s1015_s8 = inlined_call_operand.vmem [shape: f32[1,8], index: 8, kind: input, shape index: {}]   ;;  %s1016_s9 = inlined_call_operand.vmem [shape: f32[32,8], index: 9, kind: output, shape index: {}]  }
   0x1   :  { %v630_v1 = vld.sshfl [vmem:[%s1007_s1] sm:$0x11 pattern:$0x75316420]  ;;  %v52_v3 = vunpack.c.l.s4 %v765_v2  ;;  %v38_v4 = vld [vmem:[%s1008_s2 + $0x8] sm:$0xff]  ;;  %v39_v5 = vld [vmem:[%s1008_s2 + $0x10] sm:$0xff] }
   0x2   :  { %v830_v6 = vshrl.u32 %v54_v0, 7  ;;  %v703_v7 = vpack.i.bf16 %v39_v5, %v38_v4  ;;  %v50_v8 = vcombine.high %v630_v1, %v630_v1  ;;  %v37_v16 = vld [vmem:[%s1008_s2] sm:$0xff]  ;;  %v40_v17 = vld [vmem:[%s1008_s2 + $0x18] sm:$0xff]  ;;  %v34_v23 = vld [vmem:[%s1009_s0 + $0x8] sm:$0xff]  ;;  %vm278_vm4 = vcmask 1043456   ;;  %s769_s30 = smov 16  }
   0x3   :  { %v53_v9 = vunpack.c.0.s8 %v52_v3  ;;  %v698_v19 = vpack.i.bf16 %v40_v17, %v37_v16  ;;  %v35_v24 = vld [vmem:[%s1009_s0 + $0x10] sm:$0xff]  ;;  %v758_v32 = vld [vmem:[%s1010_s3 + $0x8] ss:$0 sps:$4 sm:$0xff]   ;;  %v33_v33 = vld [vmem:[%s1009_s0] sm:$0xff]  ;;  %vm244_vm9 = vcmask 64512   ;;  %vm249_vm10 = vcmask 130048  }
   0x4   :  { %704 = vrot.lane.b32.xlu1 %v703_v7, %s766_s15  ;;  %v67_v11 = vsub.s32 0, %v830_v6  ;;  %v108_v21 = vadd.s32 16, %v830_v6  ;;  %vm191_vm2 = vcmp.lt.s32.totalorder %v830_v6, 1  ;;  %vm166_vm3 = vcmp.lt.s32.totalorder %v830_v6, 2  ;;  %v36_v34 = vld [vmem:[%s1009_s0 + $0x18] sm:$0xff]  ;;  %686 = vmatprep.subr.msk.bf16.mxu0 %vm278_vm4, %v758_v32  ;;  %v759_v50 = vld [vmem:[%s1010_s3] sm:$0xff]  }
   0x5   :  { %v56_v10 = vsub.s32 %v53_v9, %v830_v6  ;;  %v865_v38 = vand.u32 15, %v830_v6  ;;  %v280_v45 = vsel %vm278_vm4, %v758_v32, 0  ;;  %s768_s3 = smov 8   ;;  %vm271_vm11 = vcmask 195584   ;;  %v631_v32 = vld [vmem:[%s1012_s4] ss:$0 sm:$0xff] }
   0x6   :  { %v847_v29 = vand.u32 15, %v108_v21  ;;  %661 = vmatpush3.bf16.msra.mxu0 %v280_v45  ;;  %vm346_vm12 = vcmp.lt.s32.totalorder %v830_v6, 4  ;;  %vm415_vm15 = vcmask 261120  }
   0x7   :  { %v57_v12 = vrot.slane %v630_v1, %v56_v10  ;;  %v64_v13 = vrot.slane %v50_v8, %v56_v10  ;;  %vm196_vm6 = vcmp.ge.s32.totalorder %v865_v38, 1  ;;  %662 = vmatprep.subr.bf16.mxu0 %v759_v50  ;;  %vm171_vm8 = vcmp.ge.s32.totalorder %v865_v38, 2 }
   0x8   :  { %vm198_vm5 = vcmp.ge.s32.totalorder %v847_v29, 1  ;;  %vm173_vm7 = vcmp.ge.s32.totalorder %v847_v29, 2  ;;  %vm353_vm13 = vcmp.ge.s32.totalorder %v847_v29, 4  ;;  %vm351_vm14 = vcmp.ge.s32.totalorder %v865_v38, 4  ;;  %v642_v29 = vld [vmem:[%s1015_s8] ss:$0 sm:$0xff] }
   0x9   :  { %v68_v14 = vrot.slane %v57_v12, %v67_v11  ;;  %v72_v15 = vrot.slane %v64_v13, %v67_v11 }
   0xa   :  { %663 = vmatpush3.bf16.msra.mxu0 %v759_v50 }
   0xb   :  { %v693_v18 = vpack.i.bf16 %v72_v15, %v68_v14 }
   0xd   :  { %694 = vrot.lane.b32.xlu0 %v693_v18, %s767_s19 }
  0x11   :  { %699 = vrot.lane.b32.xlu0 %v698_v19, %s766_s15 }
  0x76   :  { %v705_v20 = vpop.permute.xlu1 %704 }
  0x77   :  { %v707_v25 = vunpack.i.h.bf16 %v705_v20  ;;  %v706_v26 = vunpack.i.l.bf16 %v705_v20 }
  0x7f   :  { %v695_v22 = vpop.permute.xlu0 %694 }
  0x80   :  { %v697_v27 = vunpack.i.h.bf16 %v695_v22  ;;  %v696_v28 = vunpack.i.l.bf16 %v695_v22 }
  0x82   :  { %v97_v30 = vsel %vm95_vm0, %v34_v23, %v696_v28  ;;  %v98_v31 = vsel %vm95_vm0, %v35_v24, %v697_v27  ;;  %v96_v46 = vsel %vm95_vm0, %v33_v33, %v696_v28  ;;  %v99_v47 = vsel %vm95_vm0, %v36_v34, %v697_v27 }
  0x83   :  { %v102_v35 = vsel %vm100_vm1, %v97_v30, %v706_v26  ;;  %v103_v36 = vsel %vm100_vm1, %v98_v31, %v707_v25  ;;  %v700_v37 = vpop.permute.xlu0 %699  ;;  %v760_v31 = vld [vmem:[%s1011_s5 + $0x10] sm:$0xff]   ;;  %vm446_vm0 = vcmask 392192  }
  0x84   :  { %v163_v39 = vrot.slane %v102_v35, 6  ;;  %v164_v40 = vrot.slane %v103_v36, 6  ;;  %v188_v41 = vrot.slane %v102_v35, 7  ;;  %v189_v42 = vrot.slane %v103_v36, 7  ;;  %668 = vmatprep.subr.bf16.mxu1 %v760_v31 }
  0x85   :  { %v702_v43 = vunpack.i.h.bf16 %v700_v37  ;;  %v701_v44 = vunpack.i.l.bf16 %v700_v37  ;;  %669 = vmatpush3.bf16.msra.mxu1 %v760_v31 }
  0x86   :  { %v193_v48 = vsel %vm191_vm2, %v188_v41, %v189_v42  ;;  %v168_v49 = vsel %vm166_vm3, %v163_v39, %v164_v40 }
  0x87   :  { %v101_v51 = vsel %vm100_vm1, %v96_v46, %v701_v44  ;;  %v104_v52 = vsel %vm100_vm1, %v99_v47, %v702_v43  ;;  %v210_v57 = vsel %vm198_vm5, %v193_v48, 0.0  ;;  %v185_v13 = vsel %vm173_vm7, %v168_v49, 0.0  ;;  %v762_v46 = vld [vmem:[%s1011_s5] sm:$0xff]  }
  0x88   :  { %v162_v53 = vrot.slane %v101_v51, 6  ;;  %v165_v54 = vrot.slane %v104_v52, 6  ;;  %v187_v55 = vrot.slane %v101_v51, 7  ;;  %v190_v56 = vrot.slane %v104_v52, 7 }
  0x89   :  { %v723_v3 = vpack.i.bf16 %v104_v52, %v103_v36  ;;  %v713_v4 = vpack.i.bf16 %v102_v35, %v101_v51 }
  0x8a   :  { %v192_v58 = vsel %vm191_vm2, %v189_v42, %v190_v56  ;;  %v194_v59 = vsel %vm191_vm2, %v187_v55, %v188_v41  ;;  %v195_v60 = vsel %vm191_vm2, %v190_v56, %v187_v55  ;;  %v167_v61 = vsel %vm166_vm3, %v164_v40, %v165_v54 }
  0x8b   :  { %v718_v62 = vpack.i.bf16 %v192_v58, %v210_v57  ;;  %v208_v63 = vsel %vm196_vm6, %v195_v60, 0.0  ;;  %v169_v0 = vsel %vm166_vm3, %v162_v53, %v163_v39  ;;  %v170_v1 = vsel %vm166_vm3, %v165_v54, %v162_v53  ;;  %v761_v39 = vld [vmem:[%s1011_s5 + $0x8] sm:$0xff]   ;;  %s770_s5 = smov 32  }
  0x8c   :  { %v708_v2 = vpack.i.bf16 %v194_v59, %v208_v63  ;;  %v183_v17 = vsel %vm171_vm8, %v170_v1, 0.0  ;;  %670 = vmatprep.subr.bf16.mxu1 %v761_v39 }
  0x8d   :  { %719 = vrot.lane.b32.xlu0 %v718_v62, %s768_s3  ;;  %671 = vmatpush3.bf16.msra.mxu1 %v761_v39 }
  0x8e   :  { %709 = vrot.lane.b32.xlu1 %v708_v2, %s768_s3  ;;  %672 = vmatprep.subr.bf16.mxu1 %v762_v46 }
  0x91   :  { %724 = vrot.lane.b32.xlu0 %v723_v3, %s769_s30  ;;  %673 = vmatpush3.bf16.msra.mxu1 %v762_v46 }
  0x92   :  { %714 = vrot.lane.b32.xlu1 %v713_v4, %s769_s30 }
  0xff   :  { %v720_v5 = vpop.permute.xlu0 %719 }
 0x100   :  { %v710_v7 = vpop.permute.xlu1 %709  ;;  %v722_v8 = vunpack.i.h.bf16 %v720_v5  ;;  %v721_v9 = vunpack.i.l.bf16 %v720_v5 }
 0x101   :  { %v712_v10 = vunpack.i.h.bf16 %v710_v7  ;;  %v711_v11 = vunpack.i.l.bf16 %v710_v7 }
 0x102   :  { %v248_v18 = vsel %vm244_vm9, %v167_v61, %v722_v8  ;;  %v247_v19 = vsel %vm244_vm9, %v185_v13, %v721_v9 }
 0x103   :  { %v725_v12 = vpop.permute.xlu0 %724  ;;  %v245_v24 = vsel %vm244_vm9, %v183_v17, %v711_v11  ;;  %v246_v25 = vsel %vm244_vm9, %v169_v0, %v712_v10 }
 0x104   :  { %v727_v14 = vunpack.i.h.bf16 %v725_v12  ;;  %v726_v15 = vunpack.i.l.bf16 %v725_v12  ;;  %v715_v16 = vpop.permute.xlu1 %714 }
 0x105   :  { %v717_v20 = vunpack.i.h.bf16 %v715_v16  ;;  %v716_v21 = vunpack.i.l.bf16 %v715_v16 }
 0x106   :  { %v252_v22 = vsel %vm249_vm10, %v247_v19, %v726_v15  ;;  %v253_v23 = vsel %vm249_vm10, %v248_v18, %v727_v14 }
 0x107   :  { %v255_v26 = vpack.c.bf16 %v253_v23, %v252_v22  ;;  %v250_v27 = vsel %vm249_vm10, %v245_v24, %v716_v21  ;;  %v251_v28 = vsel %vm249_vm10, %v246_v25, %v717_v20 }
 0x108   :  { %v254_v30 = vpack.c.bf16 %v251_v28, %v250_v27 }
 0x10a   :  { %664 = vmatprep.mubr.msk.bf16.mxu0 %vm271_vm11, %v254_v30 }
 0x10b   :  { %665 = vmatmul.mubr.msk.bf16.vlgmr.msra.gmra.mxu0 %vm271_vm11, %v255_v26 }
 0x1cb   :  { %v666_v33 = vpop.f32.mrf.mxu0 }
 0x1cc   :  { %v325_v34 = vadd.f32 %v666_v33, %v631_v32  ;;  %v636_v33 = vld [vmem:[%s1014_s6] ss:$0 sm:$0xff] }
 0x1cd   :  { %v316_v35 = vpop.f32.mrf.mxu0 }
 0x1ce   :  { %v317_v36 = vadd.f32 %v631_v32, %v316_v35  ;;  %v333_v42 = vmax.f32 %v325_v34, 0.0 }
 0x1cf   :  { %v667_v37 = vpop.f32.mrf.mxu0 }
 0x1d0   :  { %v331_v40 = vmax.f32 %v317_v36, 0.0  ;;  %v328_v41 = vadd.f32 %v667_v37, %v631_v32  ;;  %v344_v51 = vrot.slane %v333_v42, 4  ;;  %v369_v53 = vrot.slane %v333_v42, 6  ;;  %v764_v37 = vld [vmem:[%s1013_s7] sm:$0xff]  }
 0x1d1   :  { %v319_v43 = vpop.f32.mrf.mxu0 }
 0x1d2   :  { %v334_v44 = vmax.f32 %v328_v41, 0.0  ;;  %v320_v45 = vadd.f32 %v631_v32, %v319_v43  ;;  %v367_v47 = vrot.slane %v331_v40, 6  ;;  %v342_v52 = vrot.slane %v331_v40, 4  ;;  %v763_v32 = vld [vmem:[%s1013_s7 + $0x8] sm:$0xff]  }
 0x1d3   :  { %678 = vmatprep.subr.bf16.mxu0 %v763_v32 }
 0x1d4   :  { %v345_v48 = vrot.slane %v334_v44, 4  ;;  %v370_v49 = vrot.slane %v334_v44, 6  ;;  %v332_v50 = vmax.f32 %v320_v45, 0.0  ;;  %v743_v5 = vpack.i.bf16 %v334_v44, %v333_v42  ;;  %679 = vmatpush3.bf16.msra.mxu0 %v763_v32 }
 0x1d5   :  { %680 = vmatprep.subr.bf16.mxu0 %v764_v37 }
 0x1d6   :  { %v343_v54 = vrot.slane %v332_v50, 4  ;;  %v368_v55 = vrot.slane %v332_v50, 6  ;;  %v374_v56 = vsel %vm166_vm3, %v370_v49, %v367_v47  ;;  %v347_v58 = vsel %vm346_vm12, %v344_v51, %v345_v48 }
 0x1d7   :  { %v375_v57 = vsel %vm171_vm8, %v374_v56, 0.0  ;;  %v350_v59 = vsel %vm346_vm12, %v345_v48, %v342_v52  ;;  %v371_v1 = vsel %vm166_vm3, %v369_v53, %v370_v49  ;;  %v733_v4 = vpack.i.bf16 %v332_v50, %v331_v40 }
 0x1d8   :  { %v373_v60 = vsel %vm166_vm3, %v367_v47, %v368_v55  ;;  %v372_v61 = vsel %vm166_vm3, %v368_v55, %v369_v53  ;;  %v348_v62 = vsel %vm346_vm12, %v343_v54, %v344_v51  ;;  %v349_v63 = vsel %vm346_vm12, %v342_v52, %v343_v54  ;;  %681 = vmatpush3.bf16.msra.mxu0 %v764_v37 }
 0x1d9   :  { %v728_v0 = vpack.i.bf16 %v373_v60, %v375_v57  ;;  %v377_v2 = vsel %vm173_vm7, %v372_v61, 0.0  ;;  %v365_v13 = vsel %vm353_vm13, %v348_v62, 0.0  ;;  %v363_v18 = vsel %vm351_vm14, %v350_v59, 0.0 }
 0x1da   :  { %v738_v3 = vpack.i.bf16 %v371_v1, %v377_v2 }
 0x1db   :  { %729 = vrot.lane.b32.xlu1 %v728_v0, %s769_s30 }
 0x1dc   :  { %739 = vrot.lane.b32.xlu0 %v738_v3, %s769_s30 }
 0x1df   :  { %734 = vrot.lane.b32.xlu1 %v733_v4, %s770_s5 }
 0x1e0   :  { %744 = vrot.lane.b32.xlu0 %v743_v5, %s770_s5 }
 0x24d   :  { %v730_v7 = vpop.permute.xlu1 %729 }
 0x24e   :  { %v740_v8 = vpop.permute.xlu0 %739  ;;  %v732_v9 = vunpack.i.h.bf16 %v730_v7  ;;  %v731_v10 = vunpack.i.l.bf16 %v730_v7 }
 0x24f   :  { %v742_v11 = vunpack.i.h.bf16 %v740_v8  ;;  %v741_v12 = vunpack.i.l.bf16 %v740_v8 }
 0x250   :  { %v411_v21 = vsel %vm249_vm10, %v363_v18, %v731_v10  ;;  %v412_v22 = vsel %vm249_vm10, %v349_v63, %v732_v9 }
 0x251   :  { %v735_v14 = vpop.permute.xlu1 %734  ;;  %v414_v23 = vsel %vm249_vm10, %v347_v58, %v742_v11  ;;  %v413_v24 = vsel %vm249_vm10, %v365_v13, %v741_v12 }
 0x252   :  { %v737_v15 = vunpack.i.h.bf16 %v735_v14  ;;  %v736_v16 = vunpack.i.l.bf16 %v735_v14  ;;  %v745_v17 = vpop.permute.xlu0 %744 }
 0x253   :  { %v747_v19 = vunpack.i.h.bf16 %v745_v17  ;;  %v746_v20 = vunpack.i.l.bf16 %v745_v17 }
 0x254   :  { %v416_v25 = vsel %vm415_vm15, %v411_v21, %v736_v16  ;;  %v417_v26 = vsel %vm415_vm15, %v412_v22, %v737_v15 }
 0x255   :  { %v418_v27 = vsel %vm415_vm15, %v413_v24, %v746_v20  ;;  %v419_v28 = vsel %vm415_vm15, %v414_v23, %v747_v19  ;;  %v420_v30 = vpack.c.bf16 %v417_v26, %v416_v25 }
 0x256   :  { %v421_v31 = vpack.c.bf16 %v419_v28, %v418_v27 }
 0x257   :  { %674 = vmatprep.mubr.msk.bf16.mxu1 %vm446_vm0, %v420_v30 }
 0x258   :  { %675 = vmatmul.mubr.msk.bf16.vlgmr.msra.gmra.mxu1 %vm446_vm0, %v421_v31 }
 0x318   :  { %v676_v34 = vpop.f32.mrf.mxu1 }
 0x319   :  { %v496_v35 = vadd.f32 %v676_v34, %v636_v33 }
 0x31a   :  { %v487_v36 = vpop.f32.mrf.mxu1 }
 0x31b   :  { %v488_v39 = vadd.f32 %v636_v33, %v487_v36  ;;  %v504_v40 = vmax.f32 %v496_v35, 0.0 }
 0x31c   :  { %v677_v41 = vpop.f32.mrf.mxu1 }
 0x31d   :  { %v502_v42 = vmax.f32 %v488_v39, 0.0  ;;  %v499_v43 = vadd.f32 %v677_v41, %v636_v33  ;;  %v513_v47 = vrot.slane %v504_v40, 4 }
 0x31e   :  { %v490_v44 = vpop.f32.mrf.mxu1 }
 0x31f   :  { %v505_v45 = vmax.f32 %v499_v43, 0.0  ;;  %v491_v46 = vadd.f32 %v636_v33, %v490_v44  ;;  %v511_v48 = vrot.slane %v502_v42, 4 }
 0x321   :  { %v753_v49 = vpack.i.bf16 %v505_v45, %v504_v40  ;;  %v514_v50 = vrot.slane %v505_v45, 4  ;;  %v503_v51 = vmax.f32 %v491_v46, 0.0 }
 0x323   :  { %v518_v52 = vsel %vm346_vm12, %v514_v50, %v511_v48  ;;  %v512_v53 = vrot.slane %v503_v51, 4  ;;  %v748_v54 = vpack.i.bf16 %v503_v51, %v502_v42  ;;  %754 = vrot.lane.b32.xlu0 %v753_v49, %s769_s30  ;;  %v515_v55 = vsel %vm346_vm12, %v513_v47, %v514_v50 }
 0x324   :  { %v519_v4 = vsel %vm351_vm14, %v518_v52, 0.0 }
 0x325   :  { %v516_v56 = vsel %vm346_vm12, %v512_v53, %v513_v47  ;;  %749 = vrot.lane.b32.xlu1 %v748_v54, %s769_s30  ;;  %v517_v57 = vsel %vm346_vm12, %v511_v48, %v512_v53 }
 0x326   :  { %v521_v61 = vsel %vm353_vm13, %v516_v56, 0.0 }
 0x395   :  { %v755_v58 = vpop.permute.xlu0 %754 }
 0x396   :  { %v757_v59 = vunpack.i.h.bf16 %v755_v58  ;;  %v756_v60 = vunpack.i.l.bf16 %v755_v58 }
 0x397   :  { %v750_v62 = vpop.permute.xlu1 %749 }
 0x398   :  { %v541_v63 = vsel %vm249_vm10, %v521_v61, %v756_v60  ;;  %v542_v0 = vsel %vm249_vm10, %v515_v55, %v757_v59  ;;  %v752_v1 = vunpack.i.h.bf16 %v750_v62  ;;  %v751_v2 = vunpack.i.l.bf16 %v750_v62 }
 0x399   :  { %v544_v3 = vpack.c.bf16 %v542_v0, %v541_v63 }
 0x39a   :  { %v539_v6 = vsel %vm249_vm10, %v519_v4, %v751_v2  ;;  %v540_v5 = vsel %vm249_vm10, %v517_v57, %v752_v1 }
 0x39b   :  { %v543_v7 = vpack.c.bf16 %v540_v5, %v539_v6 }
 0x39d   :  { %682 = vmatprep.mubr.msk.bf16.mxu0 %vm415_vm15, %v543_v7 }
 0x39e   :  { %683 = vmatmul.mubr.msk.bf16.vlgmr.msra.gmra.mxu0 %vm415_vm15, %v544_v3 }
 0x45e   :  { %v684_v8 = vpop.f32.mrf.mxu0 }
 0x45f   :  { %v612_v9 = vadd.f32 %v684_v8, %v642_v29 }
 0x460   :  { %v603_v10 = vpop.f32.mrf.mxu0 }
 0x461   :  { %v620_v11 = vmax.f32 %v612_v9, 0.0  ;;  %v604_v12 = vadd.f32 %v642_v29, %v603_v10 }
 0x462   :  { %v685_v38 = vpop.f32.mrf.mxu0 }
 0x463   :  { %624 = vst.msk [vmem:[%s1016_s9 + $0x10] sm:$0xff] %vm244_vm9, %v620_v11  ;;  %v618_v13 = vmax.f32 %v604_v12, 0.0  ;;  %v615_v14 = vadd.f32 %v685_v38, %v642_v29 }
 0x464   :  { %v606_v15 = vpop.f32.mrf.mxu0 }
 0x465   :  { %622 = vst.msk [vmem:[%s1016_s9] sm:$0xff] %vm244_vm9, %v618_v13  ;;  %v621_v16 = vmax.f32 %v615_v14, 0.0  ;;  %v607_v17 = vadd.f32 %v642_v29, %v606_v15 }
 0x467   :  { %625 = vst.msk [vmem:[%s1016_s9 + $0x18] sm:$0xff] %vm244_vm9, %v621_v16  ;;  %v619_v18 = vmax.f32 %v607_v17, 0.0 }
 0x469   :  { %623 = vst.msk [vmem:[%s1016_s9 + $0x8] sm:$0xff] %vm244_vm9, %v619_v18 }

</bundles_post_ra>
